<compile_context>
chip_gen: v7x
topology: tpu7x:2x2x1
jax: 0.10.0
libtpu: 0.0.40
codegen_flags: <defaults>
</compile_context>

<pallas_src>
import numpy as np
import jax
import jax.numpy as jnp
from jax import lax
from jax.experimental import pallas as pl
from jax.experimental.pallas import tpu as pltpu


_VMEM_LIMIT_BYTES = 32 * 1024 * 1024  # safe scoped-VMEM budget on v5e/v6e/v7x


# ------------------------------ Pallas kernels -------------------------------


def input_proj_kernel(x_ref, wr_ref, wz_ref, wn_ref, br_ref, bz_ref, bn_ref,
                      gr_ref, gz_ref, gn_ref):
    """Hoisted input projection for one GRU layer, one row-tile of (T*B) rows.

    gi_g = x @ W_ih_g + b_g  for g in {r, z, n}.  b_r / b_z already contain the
    foldable hidden biases b_hh_r / b_hh_z.  Accumulation is f32 on the MXU.
    """
    x = x_ref[...]
    gr_ref[...] = jnp.dot(x, wr_ref[...], preferred_element_type=jnp.float32) + br_ref[...]
    gz_ref[...] = jnp.dot(x, wz_ref[...], preferred_element_type=jnp.float32) + bz_ref[...]
    gn_ref[...] = jnp.dot(x, wn_ref[...], preferred_element_type=jnp.float32) + bn_ref[...]


def _gru_chunk(gir_ref, giz_ref, gin_ref, whr, whz, whn, bhn, h_ref, emit):
    """Run the GRU recurrence over one time chunk.

    Only the hidden->hidden matmuls remain inside the serialized loop.  h_ref
    carries h_{t-1} in f32 across grid steps; matmul inputs are cast to the
    weight dtype (bf16 on v6e/v7x); accumulation and gate math stay in f32.
    The chunk length is small and static -> fully unrolled (LLO visibility).
    """
    tc = gir_ref.shape[0]
    for t in range(tc):
        h_prev = h_ref[...]
        hm = h_prev.astype(whr.dtype)
        gh_r = jnp.dot(hm, whr, preferred_element_type=jnp.float32)
        gh_z = jnp.dot(hm, whz, preferred_element_type=jnp.float32)
        gh_n = jnp.dot(hm, whn, preferred_element_type=jnp.float32) + bhn
        r = jax.nn.sigmoid(gir_ref[t] + gh_r)
        z = jax.nn.sigmoid(giz_ref[t] + gh_z)
        n = jnp.tanh(gin_ref[t] + r * gh_n)
        h_new = (1.0 - z) * n + z * h_prev          # PyTorch GRU update
        h_ref[...] = h_new
        emit(t, h_new)
    # TODO(synk): hold W_hh in MXU weight registers across timesteps via
    # pltpu.matmul_push_rhs / matmul_acc_lhs (RHS is constant for all T steps).


def gru_seq_kernel(gir_ref, giz_ref, gin_ref, whr_ref, whz_ref, whn_ref, bhn_ref,
                   out_ref, h_ref):
    """Middle GRU layer: writes the hidden state at every timestep of the chunk."""
    @pl.when(pl.program_id(0) == 0)
    def _():
        h_ref[...] = jnp.zeros_like(h_ref)

    whr = whr_ref[...]
    whz = whz_ref[...]
    whn = whn_ref[...]
    bhn = jnp.broadcast_to(bhn_ref[...], h_ref.shape)   # hoisted broadcast

    def emit(t, h_new):
        out_ref[t] = h_new.astype(out_ref.dtype)

    _gru_chunk(gir_ref, giz_ref, gin_ref, whr, whz, whn, bhn, h_ref, emit)


def gru_last_kernel(len_ref, gir_ref, giz_ref, gin_ref, whr_ref, whz_ref, whn_ref,
                    bhn_ref, out_ref, h_ref):
    """Last GRU layer: latches h only at t == lengths-1 per row and fuses l2norm.

    out_ref is a (B, H) accumulator resident across the whole "arbitrary" T grid,
    so the full (T, B, H) sequence of the last layer never touches HBM.
    """
    i = pl.program_id(0)
    tc = gir_ref.shape[0]

    @pl.when(i == 0)
    def _():
        h_ref[...] = jnp.zeros_like(h_ref)
        out_ref[...] = jnp.zeros_like(out_ref)

    whr = whr_ref[...]
    whz = whz_ref[...]
    whn = whn_ref[...]
    bhn = jnp.broadcast_to(bhn_ref[...], h_ref.shape)
    last_t = len_ref[...] - 1                        # (B, 1) int32

    def emit(t, h_new):
        take = last_t == (i * tc + t)                # (B, 1) bool
        out_ref[...] = jnp.where(take, h_new, out_ref[...])

    _gru_chunk(gir_ref, giz_ref, gin_ref, whr, whz, whn, bhn, h_ref, emit)

    @pl.when(i == pl.num_programs(0) - 1)
    def _():
        # fused l2norm over the embedding dim (rsqrt -> EUP slot).
        # Matches PyTorch l2norm (no epsilon): an all-zero row would give NaN.
        last = out_ref[...]
        inv = lax.rsqrt(jnp.sum(last * last, axis=1, keepdims=True))
        out_ref[...] = last * inv


# --------------------------------- wrappers ----------------------------------


def _row_tile(m):
    # full array if small, else a 256-row tile (multiple of 8 sublanes).
    return m if m <= 256 else 256


def _pick_t_chunk(t, target):
    tc = max(1, min(int(target), t))
    while t % tc:
        tc -= 1
    return tc


def run_input_projection(x2d, w_r, w_z, w_n, b_r, b_z, b_n):
    m, din = x2d.shape
    h = w_r.shape[1]
    tm = _row_tile(m)
    row_in = pl.BlockSpec((tm, din), lambda i: (i, 0))
    row_out = pl.BlockSpec((tm, h), lambda i: (i, 0))
    w_spec = pl.BlockSpec((din, h), lambda i: (0, 0))
    b_spec = pl.BlockSpec((1, h), lambda i: (0, 0))
    return pl.pallas_call(
        input_proj_kernel,
        out_shape=tuple(jax.ShapeDtypeStruct((m, h), jnp.float32) for _ in range(3)),
        grid=(pl.cdiv(m, tm),),
        in_specs=[row_in, w_spec, w_spec, w_spec, b_spec, b_spec, b_spec],
        out_specs=(row_out, row_out, row_out),
        compiler_params=pltpu.CompilerParams(
            dimension_semantics=("parallel",),
            vmem_limit_bytes=_VMEM_LIMIT_BYTES),
    )(x2d, w_r, w_z, w_n, b_r, b_z, b_n)


def run_gru_seq(gi_r, gi_z, gi_n, w_r, w_z, w_n, b_n, out_dtype, t_chunk):
    t, b, h = gi_r.shape
    tc = _pick_t_chunk(t, t_chunk)
    g_spec = pl.BlockSpec((tc, b, h), lambda i: (i, 0, 0))
    w_spec = pl.BlockSpec((h, h), lambda i: (0, 0))
    b_spec = pl.BlockSpec((1, h), lambda i: (0, 0))
    return pl.pallas_call(
        gru_seq_kernel,
        out_shape=jax.ShapeDtypeStruct((t, b, h), out_dtype),
        grid=(t // tc,),
        in_specs=[g_spec, g_spec, g_spec, w_spec, w_spec, w_spec, b_spec],
        out_specs=pl.BlockSpec((tc, b, h), lambda i: (i, 0, 0)),
        scratch_shapes=[pltpu.VMEM((b, h), jnp.float32)],
        compiler_params=pltpu.CompilerParams(
            dimension_semantics=("arbitrary",),
            vmem_limit_bytes=_VMEM_LIMIT_BYTES),
    )(gi_r, gi_z, gi_n, w_r, w_z, w_n, b_n)


def run_gru_last(gi_r, gi_z, gi_n, w_r, w_z, w_n, b_n, lengths_col, t_chunk):
    t, b, h = gi_r.shape
    tc = _pick_t_chunk(t, t_chunk)
    g_spec = pl.BlockSpec((tc, b, h), lambda i: (i, 0, 0))
    w_spec = pl.BlockSpec((h, h), lambda i: (0, 0))
    b_spec = pl.BlockSpec((1, h), lambda i: (0, 0))
    len_spec = pl.BlockSpec((b, 1), lambda i: (0, 0))
    return pl.pallas_call(
        gru_last_kernel,
        out_shape=jax.ShapeDtypeStruct((b, h), jnp.float32),
        grid=(t // tc,),
        in_specs=[len_spec, g_spec, g_spec, g_spec, w_spec, w_spec, w_spec, b_spec],
        out_specs=pl.BlockSpec((b, h), lambda i: (0, 0)),
        scratch_shapes=[pltpu.VMEM((b, h), jnp.float32)],
        compiler_params=pltpu.CompilerParams(
            dimension_semantics=("arbitrary",),
            vmem_limit_bytes=_VMEM_LIMIT_BYTES),
    )(lengths_col, gi_r, gi_z, gi_n, w_r, w_z, w_n, b_n)


# ---------------------------- parameters / forward ----------------------------


def make_params(key, vocab_size, word_dim, embed_size, num_layers):
    per = 12
    keys = jax.random.split(key, 1 + per * num_layers)
    params = {
        # nn.Embedding weight, uniform(-0.1, 0.1) as in init_weights()
        "embed": jax.random.uniform(keys[0], (vocab_size, word_dim),
                                    jnp.float32, -0.1, 0.1),
    }
    bound = 1.0 / np.sqrt(embed_size)

    def u(k, shape):
        return jax.random.uniform(k, shape, jnp.float32, -bound, bound)

    layers = []
    for l in range(num_layers):
        din = word_dim if l == 0 else embed_size
        ks = keys[1 + per * l: 1 + per * (l + 1)]
        layers.append(dict(
            # per-gate layout == PyTorch weight_ih/hh split into [r, z, n] chunks,
            # pre-transposed to (in, H) so each gate is a separate lane-dense tile.
            w_ih_r=u(ks[0], (din, embed_size)),
            w_ih_z=u(ks[1], (din, embed_size)),
            w_ih_n=u(ks[2], (din, embed_size)),
            w_hh_r=u(ks[3], (embed_size, embed_size)),
            w_hh_z=u(ks[4], (embed_size, embed_size)),
            w_hh_n=u(ks[5], (embed_size, embed_size)),
            b_ih_r=u(ks[6], (1, embed_size)),
            b_ih_z=u(ks[7], (1, embed_size)),
            b_ih_n=u(ks[8], (1, embed_size)),
            b_hh_r=u(ks[9], (1, embed_size)),
            b_hh_z=u(ks[10], (1, embed_size)),
            b_hh_n=u(ks[11], (1, embed_size)),
        ))
    params["layers"] = layers
    return params


def encoder_text_forward(params, x_ids, lengths, use_abs=False,
                         compute_dtype=jnp.float32, t_chunk=8):
    """x_ids: (B, T) int32 ids; lengths: (B,) valid lengths (>= 1).

    pack_padded_sequence only skips padded steps; because the output is gathered
    at t = lengths-1 (last *valid* step) and the GRU is causal, running all T
    steps and gathering at lengths-1 gives identical results (also for stacked
    layers, since h at t <= lengths-1 only depends on inputs at t <= lengths-1).
    """
    b, t = x_ids.shape
    num_layers = len(params["layers"])

    emb = jnp.take(params["embed"], x_ids, axis=0)              # (B, T, Dw) f32
    x = jnp.transpose(emb, (1, 0, 2)).astype(compute_dtype)     # (T, B, Dw) time-major
    lengths_col = jnp.asarray(lengths, jnp.int32).reshape(b, 1)

    # pad batch to a multiple of 8 sublanes for MXU/VPU occupancy of the recurrence
    b_pad = -(-b // 8) * 8
    if b_pad != b:
        x = jnp.pad(x, ((0, 0), (0, b_pad - b), (0, 0)))
        lengths_col = jnp.pad(lengths_col, ((0, b_pad - b), (0, 0)), constant_values=1)

    out = None
    for l, lyr in enumerate(params["layers"]):
        t_, bp, din = x.shape
        h_dim = lyr["w_hh_r"].shape[0]
        # fold b_hh_{r,z} into the hoisted projection biases (they are pure sums
        # in the r / z gates); b_hh_n must stay inside (multiplied by r).
        b_r = lyr["b_ih_r"] + lyr["b_hh_r"]
        b_z = lyr["b_ih_z"] + lyr["b_hh_z"]
        b_nn = lyr["b_ih_n"]
        gi_r, gi_z, gi_n = run_input_projection(
            x.reshape(t_ * bp, din),
            lyr["w_ih_r"].astype(compute_dtype),
            lyr["w_ih_z"].astype(compute_dtype),
            lyr["w_ih_n"].astype(compute_dtype),
            b_r, b_z, b_nn)
        gi_r = gi_r.reshape(t_, bp, h_dim)
        gi_z = gi_z.reshape(t_, bp, h_dim)
        gi_n = gi_n.reshape(t_, bp, h_dim)
        w_r = lyr["w_hh_r"].astype(compute_dtype)
        w_z = lyr["w_hh_z"].astype(compute_dtype)
        w_n = lyr["w_hh_n"].astype(compute_dtype)
        if l < num_layers - 1:
            # TODO(synk): fuse adjacent GRU layers into one pallas_call to avoid
            # this (T, B, H) HBM round trip on the activation stream.
            x = run_gru_seq(gi_r, gi_z, gi_n, w_r, w_z, w_n, lyr["b_hh_n"],
                            compute_dtype, t_chunk)
        else:
            out = run_gru_last(gi_r, gi_z, gi_n, w_r, w_z, w_n, lyr["b_hh_n"],
                               lengths_col, t_chunk)

    out = out[:b]
    if use_abs:
        out = jnp.abs(out)
    return out


# --------------------------------- reference ----------------------------------


def reference_forward(params, x_ids, lengths, use_abs=False, compute_dtype=jnp.float32):
    """Pure-JAX scan-based GRU reference with the same cast points as the kernels."""
    b, t = x_ids.shape
    num_layers = len(params["layers"])
    emb = jnp.take(params["embed"], x_ids, axis=0)
    h_seq = jnp.transpose(emb, (1, 0, 2)).astype(compute_dtype)   # (T, B, D)
    for l, lyr in enumerate(params["layers"]):
        h_dim = lyr["w_hh_r"].shape[0]
        wir = lyr["w_ih_r"].astype(compute_dtype)
        wiz = lyr["w_ih_z"].astype(compute_dtype)
        win = lyr["w_ih_n"].astype(compute_dtype)
        whr = lyr["w_hh_r"].astype(compute_dtype)
        whz = lyr["w_hh_z"].astype(compute_dtype)
        whn = lyr["w_hh_n"].astype(compute_dtype)
        bir, biz, bin_ = lyr["b_ih_r"], lyr["b_ih_z"], lyr["b_ih_n"]
        bhr, bhz, bhn = lyr["b_hh_r"], lyr["b_hh_z"], lyr["b_hh_n"]

        def step(h_prev, x_t):
            gi_r = jnp.dot(x_t, wir, preferred_element_type=jnp.float32) + bir
            gi_z = jnp.dot(x_t, wiz, preferred_element_type=jnp.float32) + biz
            gi_n = jnp.dot(x_t, win, preferred_element_type=jnp.float32) + bin_
            hm = h_prev.astype(compute_dtype)
            gh_r = jnp.dot(hm, whr, preferred_element_type=jnp.float32) + bhr
            gh_z = jnp.dot(hm, whz, preferred_element_type=jnp.float32) + bhz
            gh_n = jnp.dot(hm, whn, preferred_element_type=jnp.float32) + bhn
            r = jax.nn.sigmoid(gi_r + gh_r)
            z = jax.nn.sigmoid(gi_z + gh_z)
            n = jnp.tanh(gi_n + r * gh_n)
            h_new = (1.0 - z) * n + z * h_prev
            return h_new, h_new

        _, h_f32 = lax.scan(step, jnp.zeros((b, h_dim), jnp.float32), h_seq)
        h_seq = h_f32.astype(compute_dtype) if l < num_layers - 1 else h_f32

    idx = jnp.asarray(lengths, jnp.int32) - 1
    last = h_seq[idx, jnp.arange(b), :]
    norm = jnp.sqrt(jnp.sum(last * last, axis=1, keepdims=True))
    out = last / norm
    if use_abs:
        out = jnp.abs(out)
    return out


# ------------------------------------ main ------------------------------------


if __name__ == "__main__":
    vocab_size, word_dim, embed_size, num_layers = 50, 32, 32, 2
    B, T = 2, 8

    key = jax.random.PRNGKey(0)
    k_params, k_ids = jax.random.split(key)
    params = make_params(k_params, vocab_size, word_dim, embed_size, num_layers)

    x_ids = jax.random.randint(k_ids, (B, T), 0, vocab_size, dtype=jnp.int32)
    lengths = np.array([8, 5], dtype=np.int32)   # sorted desc, like pack_padded_sequence

    # f32 compute path (closest to PyTorch numerics); t_chunk=4 -> grid over T of 2
    out_f32 = jax.block_until_ready(
        encoder_text_forward(params, x_ids, lengths,
                             compute_dtype=jnp.float32, t_chunk=4))
    ref_f32 = jax.block_until_ready(
        reference_forward(params, x_ids, lengths, compute_dtype=jnp.float32))
    np.testing.assert_allclose(np.asarray(out_f32), np.asarray(ref_f32),
                               rtol=2e-3, atol=2e-3)

    # bf16 matmul path (v6e/v7x MXU-native; f32 accumulation / gate math / h carry)
    out_bf16 = jax.block_until_ready(
        encoder_text_forward(params, x_ids, lengths,
                             compute_dtype=jnp.bfloat16, t_chunk=4))
    ref_bf16 = jax.block_until_ready(
        reference_forward(params, x_ids, lengths, compute_dtype=jnp.bfloat16))
    np.testing.assert_allclose(np.asarray(out_bf16), np.asarray(ref_bf16),
                               rtol=2e-2, atol=2e-2)

    print("KERNEL_OK")
</pallas_src>

<mosaic_0001>
module attributes {stable_mosaic.version = 11 : i64} {
  func.func @input_proj_kernel(%arg0: i32, %arg1: memref<64x32xf32, #tpu.memory_space<vmem>>, %arg2: memref<32x32xf32, #tpu.memory_space<vmem>>, %arg3: memref<32x32xf32, #tpu.memory_space<vmem>>, %arg4: memref<32x32xf32, #tpu.memory_space<vmem>>, %arg5: memref<1x32xf32, #tpu.memory_space<vmem>>, %arg6: memref<1x32xf32, #tpu.memory_space<vmem>>, %arg7: memref<1x32xf32, #tpu.memory_space<vmem>>, %arg8: memref<64x32xf32, #tpu.memory_space<vmem>>, %arg9: memref<64x32xf32, #tpu.memory_space<vmem>>, %arg10: memref<64x32xf32, #tpu.memory_space<vmem>>) attributes {dimension_semantics = [#tpu.dimension_semantics<parallel>], iteration_bounds = array<i64: 1>, scalar_prefetch = 0 : i64, scratch_operands = 0 : i64, tpu.core_type = #tpu.core_type<tc>, window_params = [{transform_indices = @transform_0, window_bounds = array<i64: 64, 32>}, {pipeline_mode = #tpu.pipeline_mode<synchronous>, transform_indices = @transform_1, window_bounds = array<i64: 32, 32>}, {pipeline_mode = #tpu.pipeline_mode<synchronous>, transform_indices = @transform_2, window_bounds = array<i64: 32, 32>}, {pipeline_mode = #tpu.pipeline_mode<synchronous>, transform_indices = @transform_3, window_bounds = array<i64: 32, 32>}, {pipeline_mode = #tpu.pipeline_mode<synchronous>, transform_indices = @transform_4, window_bounds = array<i64: 1, 32>}, {pipeline_mode = #tpu.pipeline_mode<synchronous>, transform_indices = @transform_5, window_bounds = array<i64: 1, 32>}, {pipeline_mode = #tpu.pipeline_mode<synchronous>, transform_indices = @transform_6, window_bounds = array<i64: 1, 32>}, {transform_indices = @transform_7, window_bounds = array<i64: 64, 32>}, {transform_indices = @transform_8, window_bounds = array<i64: 64, 32>}, {transform_indices = @transform_9, window_bounds = array<i64: 64, 32>}]} {
    %c0 = arith.constant 0 : index
    %c0_0 = arith.constant 0 : index
    %0 = vector.load %arg1[%c0, %c0_0] : memref<64x32xf32, #tpu.memory_space<vmem>>, vector<64x32xf32>
    %c0_1 = arith.constant 0 : index
    %c0_2 = arith.constant 0 : index
    %1 = vector.load %arg2[%c0_1, %c0_2] : memref<32x32xf32, #tpu.memory_space<vmem>>, vector<32x32xf32>
    %cst = arith.constant dense<0.000000e+00> : vector<64x32xf32>
    %2 = tpu.matmul %0, %1, %cst {dimension_numbers = #tpu.dot_dimension_numbers<[1], [0], [0], [1], [0, 0, 1, 1], [], []>} : vector<64x32xf32>, vector<32x32xf32>, vector<64x32xf32> -> vector<64x32xf32>
    %c0_3 = arith.constant 0 : index
    %c0_4 = arith.constant 0 : index
    %3 = vector.load %arg5[%c0_3, %c0_4] : memref<1x32xf32, #tpu.memory_space<vmem>>, vector<1x32xf32>
    %4 = vector.broadcast %3 : vector<1x32xf32> to vector<64x32xf32>
    %5 = arith.addf %2, %4 : vector<64x32xf32>
    %c0_5 = arith.constant 0 : index
    %c0_6 = arith.constant 0 : index
    %6 = vector.load %arg8[%c0_5, %c0_6] : memref<64x32xf32, #tpu.memory_space<vmem>>, vector<64x32xf32>
    tpu.vector_store %arg8[%c0_5, %c0_6], %5 {strides = array<i32>} : memref<64x32xf32, #tpu.memory_space<vmem>>, vector<64x32xf32>,
    %c0_7 = arith.constant 0 : index
    %c0_8 = arith.constant 0 : index
    %7 = vector.load %arg3[%c0_7, %c0_8] : memref<32x32xf32, #tpu.memory_space<vmem>>, vector<32x32xf32>
    %cst_9 = arith.constant dense<0.000000e+00> : vector<64x32xf32>
    %8 = tpu.matmul %0, %7, %cst_9 {dimension_numbers = #tpu.dot_dimension_numbers<[1], [0], [0], [1], [0, 0, 1, 1], [], []>} : vector<64x32xf32>, vector<32x32xf32>, vector<64x32xf32> -> vector<64x32xf32>
    %c0_10 = arith.constant 0 : index
    %c0_11 = arith.constant 0 : index
    %9 = vector.load %arg6[%c0_10, %c0_11] : memref<1x32xf32, #tpu.memory_space<vmem>>, vector<1x32xf32>
    %10 = vector.broadcast %9 : vector<1x32xf32> to vector<64x32xf32>
    %11 = arith.addf %8, %10 : vector<64x32xf32>
    %c0_12 = arith.constant 0 : index
    %c0_13 = arith.constant 0 : index
    %12 = vector.load %arg9[%c0_12, %c0_13] : memref<64x32xf32, #tpu.memory_space<vmem>>, vector<64x32xf32>
    tpu.vector_store %arg9[%c0_12, %c0_13], %11 {strides = array<i32>} : memref<64x32xf32, #tpu.memory_space<vmem>>, vector<64x32xf32>,
    %c0_14 = arith.constant 0 : index
    %c0_15 = arith.constant 0 : index
    %13 = vector.load %arg4[%c0_14, %c0_15] : memref<32x32xf32, #tpu.memory_space<vmem>>, vector<32x32xf32>
    %cst_16 = arith.constant dense<0.000000e+00> : vector<64x32xf32>
    %14 = tpu.matmul %0, %13, %cst_16 {dimension_numbers = #tpu.dot_dimension_numbers<[1], [0], [0], [1], [0, 0, 1, 1], [], []>} : vector<64x32xf32>, vector<32x32xf32>, vector<64x32xf32> -> vector<64x32xf32>
    %c0_17 = arith.constant 0 : index
    %c0_18 = arith.constant 0 : index
    %15 = vector.load %arg7[%c0_17, %c0_18] : memref<1x32xf32, #tpu.memory_space<vmem>>, vector<1x32xf32>
    %16 = vector.broadcast %15 : vector<1x32xf32> to vector<64x32xf32>
    %17 = arith.addf %14, %16 : vector<64x32xf32>
    %c0_19 = arith.constant 0 : index
    %c0_20 = arith.constant 0 : index
    %18 = vector.load %arg10[%c0_19, %c0_20] : memref<64x32xf32, #tpu.memory_space<vmem>>, vector<64x32xf32>
    tpu.vector_store %arg10[%c0_19, %c0_20], %17 {strides = array<i32>} : memref<64x32xf32, #tpu.memory_space<vmem>>, vector<64x32xf32>,
    return
  }
  func.func @transform_0(%arg0: i32) -> (i32, i32) {
    %c0_i32 = arith.constant 0 : i32
    %c0_i32_0 = arith.constant 0 : i32
    return %arg0, %c0_i32 : i32, i32
  }
  func.func @transform_1(%arg0: i32) -> (i32, i32) {
    %c0_i32 = arith.constant 0 : i32
    %c0_i32_0 = arith.constant 0 : i32
    %c0_i32_1 = arith.constant 0 : i32
    return %c0_i32, %c0_i32_0 : i32, i32
  }
  func.func @transform_2(%arg0: i32) -> (i32, i32) {
    %c0_i32 = arith.constant 0 : i32
    %c0_i32_0 = arith.constant 0 : i32
    %c0_i32_1 = arith.constant 0 : i32
    return %c0_i32, %c0_i32_0 : i32, i32
  }
  func.func @transform_3(%arg0: i32) -> (i32, i32) {
    %c0_i32 = arith.constant 0 : i32
    %c0_i32_0 = arith.constant 0 : i32
    %c0_i32_1 = arith.constant 0 : i32
    return %c0_i32, %c0_i32_0 : i32, i32
  }
  func.func @transform_4(%arg0: i32) -> (i32, i32) {
    %c0_i32 = arith.constant 0 : i32
    %c0_i32_0 = arith.constant 0 : i32
    %c0_i32_1 = arith.constant 0 : i32
    return %c0_i32, %c0_i32_0 : i32, i32
  }
  func.func @transform_5(%arg0: i32) -> (i32, i32) {
    %c0_i32 = arith.constant 0 : i32
    %c0_i32_0 = arith.constant 0 : i32
    %c0_i32_1 = arith.constant 0 : i32
    return %c0_i32, %c0_i32_0 : i32, i32
  }
  func.func @transform_6(%arg0: i32) -> (i32, i32) {
    %c0_i32 = arith.constant 0 : i32
    %c0_i32_0 = arith.constant 0 : i32
    %c0_i32_1 = arith.constant 0 : i32
    return %c0_i32, %c0_i32_0 : i32, i32
  }
  func.func @transform_7(%arg0: i32) -> (i32, i32) {
    %c0_i32 = arith.constant 0 : i32
    %c0_i32_0 = arith.constant 0 : i32
    return %arg0, %c0_i32 : i32, i32
  }
  func.func @transform_8(%arg0: i32) -> (i32, i32) {
    %c0_i32 = arith.constant 0 : i32
    %c0_i32_0 = arith.constant 0 : i32
    return %arg0, %c0_i32 : i32, i32
  }
  func.func @transform_9(%arg0: i32) -> (i32, i32) {
    %c0_i32 = arith.constant 0 : i32
    %c0_i32_0 = arith.constant 0 : i32
    return %arg0, %c0_i32 : i32, i32
  }
}

</mosaic_0001>

<bundles_post_ra>
// kernel: tpu_custom_call.1
= control target key start
LH: loop header
LB: loop body
LE: loop exit
PB: predicated region body
PF: predicated region fallthrough
CT: control target
= control target key end

     0   :  { %vm48_vm0 = vcmask 261120   ;;  %s836_s1 = inlined_call_operand.vmem [shape: f32[32,32], index: 1, kind: input, shape index: {}]   ;;  %s837_s0 = inlined_call_operand.vmem [shape: f32[64,32], index: 0, kind: input, shape index: {}]   ;;  %s838_s2 = inlined_call_operand.vmem [shape: f32[32,32], index: 2, kind: input, shape index: {}]   ;;  %s839_s3 = inlined_call_operand.vmem [shape: f32[32,32], index: 3, kind: input, shape index: {}]   ;;  %s840_s4 = inlined_call_operand.vmem [shape: f32[1,32], index: 4, kind: input, shape index: {}]   ;;  %s841_s7 = inlined_call_operand.vmem [shape: f32[64,32], index: 7, kind: output, shape index: {0}]   ;;  %s842_s5 = inlined_call_operand.vmem [shape: f32[1,32], index: 5, kind: input, shape index: {}]   ;;  %s843_s6 = inlined_call_operand.vmem [shape: f32[1,32], index: 6, kind: input, shape index: {}]   ;;  %s844_s8 = inlined_call_operand.vmem [shape: f32[64,32], index: 8, kind: output, shape index: {1}]   ;;  %s845_s9 = inlined_call_operand.vmem [shape: f32[64,32], index: 9, kind: output, shape index: {2}]  }
   0x1   :  { %v37_v0 = vld [vmem:[%s836_s1] sm:$0xff]  ;;  %v38_v1 = vld [vmem:[%s836_s1 + $0x8] sm:$0xff]  ;;  %v39_v2 = vld [vmem:[%s836_s1 + $0x10] sm:$0xff] }
   0x2   :  { %v569_v3 = vpack.c.bf16 %v38_v1, %v37_v0  ;;  %v40_v4 = vld [vmem:[%s836_s1 + $0x18] sm:$0xff]  ;;  %v29_v5 = vld [vmem:[%s837_s0] sm:$0xff]  ;;  %v187_v9 = vld [vmem:[%s838_s2 + $0x8] sm:$0xff] }
   0x3   :  { %v33_v6 = vld [vmem:[%s837_s0 + $0x20] sm:$0xff]  ;;  %v573_v7 = vpack.c.bf16 %v40_v4, %v39_v2  ;;  %517 = vmatprep.mubr.msk.f32.mxu0 %vm48_vm0, %v29_v5  ;;  %v311_v11 = vld [vmem:[%s839_s3 + $0x8] sm:$0xff]  ;;  %v188_v14 = vld [vmem:[%s838_s2 + $0x10] sm:$0xff] }
   0x4   :  { %523 = vmatprep.mubr.msk.f32.mxu1 %vm48_vm0, %v33_v6  ;;  %v186_v8 = vld [vmem:[%s838_s2] sm:$0xff]  ;;  %570 = vmatprep.subr.bf16.mxu0 %v569_v3  ;;  %v189_v15 = vld [vmem:[%s838_s2 + $0x18] sm:$0xff]  ;;  %v312_v16 = vld [vmem:[%s839_s3 + $0x10] sm:$0xff] }
   0x5   :  { %593 = vmatprep.subr.bf16.mxu1 %v569_v3  ;;  %v310_v10 = vld [vmem:[%s839_s3] sm:$0xff]  ;;  %572 = vmatpush3.bf16.msra.mxu0 %v569_v3  ;;  %v577_v12 = vpack.c.bf16 %v187_v9, %v186_v8  ;;  %v313_v17 = vld [vmem:[%s839_s3 + $0x18] sm:$0xff]  ;;  %v30_v18 = vld [vmem:[%s837_s0 + $0x8] sm:$0xff]  ;;  %v581_v22 = vpack.c.bf16 %v189_v15, %v188_v14 }
   0x6   :  { %595 = vmatpush3.bf16.msra.mxu1 %v569_v3  ;;  %574 = vmatprep.subr.bf16.mxu0 %v573_v7  ;;  %v585_v13 = vpack.c.bf16 %v311_v11, %v310_v10  ;;  %v34_v19 = vld [vmem:[%s837_s0 + $0x28] sm:$0xff]  ;;  %v31_v20 = vld [vmem:[%s837_s0 + $0x10] sm:$0xff]  ;;  %v589_v23 = vpack.c.bf16 %v313_v17, %v312_v16  ;;  %v32_v24 = vld [vmem:[%s837_s0 + $0x18] sm:$0xff] }
   0x7   :  { %594 = vmatprep.subr.bf16.mxu1 %v573_v7  ;;  %v35_v21 = vld [vmem:[%s837_s0 + $0x30] sm:$0xff]  ;;  %v36_v25 = vld [vmem:[%s837_s0 + $0x38] sm:$0xff]  ;;  %v446_v26 = vld [vmem:[%s840_s4] ss:$0 sm:$0xff] }
   0x8   :  { %v455_v43 = vld [vmem:[%s842_s5] ss:$0 sm:$0xff] }
   0x9   :  { %576 = vmatpush3.bf16.msra.mxu0 %v573_v7  ;;  %v464_v44 = vld [vmem:[%s843_s6] ss:$0 sm:$0xff] }
   0xa   :  { %596 = vmatpush3.bf16.msra.mxu1 %v573_v7  ;;  %586 = vmatprep.subr.bf16.mxu0 %v585_v13 }
   0xb   :  { %578 = vmatprep.subr.bf16.mxu1 %v577_v12 }
   0xc   :  { %518 = vmatmul.mubr.msk.f32.vlgmr.msra.gmra.mrb[0].mxu0 %vm48_vm0, %v30_v18 }
   0xd   :  { %524 = vmatmul.mubr.msk.f32.vlgmr.msra.gmra.mrb[0].mxu1 %vm48_vm0, %v34_v19  ;;  %588 = vmatpush3.bf16.msra.mxu0 %v585_v13 }
   0xe   :  { %580 = vmatpush3.bf16.msra.mxu1 %v577_v12  ;;  %520 = vmatprep.mubr.msk.f32.mxu0 %vm48_vm0, %v31_v20 }
   0xf   :  { %526 = vmatprep.mubr.msk.f32.mxu1 %vm48_vm0, %v35_v21  ;;  %582 = vmatprep.subr.bf16.mxu1 %v581_v22 }
  0x10   :  { %590 = vmatprep.subr.bf16.mxu0 %v589_v23  ;;  %521 = vmatmul.mubr.msk.f32.gmra.mrb[2].mxu0 %vm48_vm0, %v32_v24 }
  0x11   :  { %527 = vmatmul.mubr.msk.f32.gmra.mrb[2].mxu1 %vm48_vm0, %v36_v25  ;;  %592 = vmatpush3.bf16.msra.mxu0 %v589_v23 }
  0x12   :  { %584 = vmatpush3.bf16.msra.mxu1 %v581_v22  ;;  %537 = vmatprep.mubr.msk.f32.mxu1 %vm48_vm0, %v29_v5 }
  0x13   :  { %557 = vmatprep.mubr.msk.f32.mxu0 %vm48_vm0, %v29_v5 }
  0x14   :  { %558 = vmatmul.mubr.msk.f32.vlgmr.msra.gmra.mrb[4].mxu0 %vm48_vm0, %v30_v18 }
  0x15   :  { %538 = vmatmul.mubr.msk.f32.vlgmr.msra.gmra.mrb[4].mxu1 %vm48_vm0, %v30_v18  ;;  %560 = vmatprep.mubr.msk.f32.mxu0 %vm48_vm0, %v31_v20 }
  0x16   :  { %540 = vmatprep.mubr.msk.f32.mxu1 %vm48_vm0, %v31_v20 }
  0x18   :  { %561 = vmatmul.mubr.msk.f32.gmra.mrb[6].mxu0 %vm48_vm0, %v32_v24 }
  0x19   :  { %541 = vmatmul.mubr.msk.f32.gmra.mrb[6].mxu1 %vm48_vm0, %v32_v24  ;;  %563 = vmatprep.mubr.msk.f32.mxu0 %vm48_vm0, %v33_v6 }
  0x1a   :  { %543 = vmatprep.mubr.msk.f32.mxu1 %vm48_vm0, %v33_v6 }
  0x1c   :  { %564 = vmatmul.mubr.msk.f32.gmra.mrb[8].mxu0 %vm48_vm0, %v34_v19 }
  0x1d   :  { %544 = vmatmul.mubr.msk.f32.gmra.mrb[8].mxu1 %vm48_vm0, %v34_v19  ;;  %566 = vmatprep.mubr.msk.f32.mxu0 %vm48_vm0, %v35_v21 }
  0x1e   :  { %546 = vmatprep.mubr.msk.f32.mxu1 %vm48_vm0, %v35_v21 }
  0x20   :  { %567 = vmatmul.mubr.msk.f32.gmra.mrb[10].mxu0 %vm48_vm0, %v36_v25 }
  0x21   :  { %547 = vmatmul.mubr.msk.f32.gmra.mrb[10].mxu1 %vm48_vm0, %v36_v25 }
  0xdf   :  { %v519_v27 = vpop.f32.mrb[0].mxu0 }
  0xe0   :  { %v525_v28 = vpop.f32.mrb[0].mxu1  ;;  %v145_v29 = vadd.f32 %v519_v27, %v446_v26  ;;  %v139_v31 = vpop.f32.mrb[1].mxu0 }
  0xe1   :  { %v165_v30 = vadd.f32 %v525_v28, %v446_v26  ;;  %v159_v32 = vpop.f32.mrb[1].mxu1  ;;  %v140_v33 = vadd.f32 %v446_v26, %v139_v31 }
  0xe2   :  { %v160_v34 = vadd.f32 %v446_v26, %v159_v32  ;;  %179 = vst.msk [vmem:[%s841_s7 + $0x8] sm:$0xff] %vm48_vm0, %v145_v29 }
  0xe3   :  { %183 = vst.msk [vmem:[%s841_s7 + $0x28] sm:$0xff] %vm48_vm0, %v165_v30  ;;  %178 = vst.msk [vmem:[%s841_s7] sm:$0xff] %vm48_vm0, %v140_v33  ;;  %v522_v35 = vpop.f32.mrb[2].mxu0 }
  0xe4   :  { %182 = vst.msk [vmem:[%s841_s7 + $0x20] sm:$0xff] %vm48_vm0, %v160_v34  ;;  %v528_v36 = vpop.f32.mrb[2].mxu1  ;;  %v155_v37 = vadd.f32 %v522_v35, %v446_v26  ;;  %v149_v39 = vpop.f32.mrb[3].mxu0 }
  0xe5   :  { %v175_v38 = vadd.f32 %v528_v36, %v446_v26  ;;  %v169_v40 = vpop.f32.mrb[3].mxu1  ;;  %v150_v41 = vadd.f32 %v446_v26, %v149_v39 }
  0xe6   :  { %v170_v42 = vadd.f32 %v446_v26, %v169_v40  ;;  %181 = vst.msk [vmem:[%s841_s7 + $0x18] sm:$0xff] %vm48_vm0, %v155_v37 }
  0xe7   :  { %185 = vst.msk [vmem:[%s841_s7 + $0x38] sm:$0xff] %vm48_vm0, %v175_v38  ;;  %180 = vst.msk [vmem:[%s841_s7 + $0x10] sm:$0xff] %vm48_vm0, %v150_v41  ;;  %v559_v46 = vpop.f32.mrb[4].mxu0 }
  0xe8   :  { %184 = vst.msk [vmem:[%s841_s7 + $0x30] sm:$0xff] %vm48_vm0, %v170_v42  ;;  %v539_v45 = vpop.f32.mrb[4].mxu1  ;;  %v393_v48 = vadd.f32 %v559_v46, %v464_v44  ;;  %v387_v50 = vpop.f32.mrb[5].mxu0 }
  0xe9   :  { %v269_v47 = vadd.f32 %v539_v45, %v455_v43  ;;  %v263_v49 = vpop.f32.mrb[5].mxu1  ;;  %v388_v52 = vadd.f32 %v464_v44, %v387_v50 }
  0xea   :  { %v264_v51 = vadd.f32 %v455_v43, %v263_v49  ;;  %427 = vst.msk [vmem:[%s845_s9 + $0x8] sm:$0xff] %vm48_vm0, %v393_v48 }
  0xeb   :  { %303 = vst.msk [vmem:[%s844_s8 + $0x8] sm:$0xff] %vm48_vm0, %v269_v47  ;;  %426 = vst.msk [vmem:[%s845_s9] sm:$0xff] %vm48_vm0, %v388_v52  ;;  %v562_v54 = vpop.f32.mrb[6].mxu0 }
  0xec   :  { %302 = vst.msk [vmem:[%s844_s8] sm:$0xff] %vm48_vm0, %v264_v51  ;;  %v542_v53 = vpop.f32.mrb[6].mxu1  ;;  %v403_v56 = vadd.f32 %v562_v54, %v464_v44  ;;  %v397_v58 = vpop.f32.mrb[7].mxu0 }
  0xed   :  { %v279_v55 = vadd.f32 %v542_v53, %v455_v43  ;;  %v273_v57 = vpop.f32.mrb[7].mxu1  ;;  %v398_v60 = vadd.f32 %v464_v44, %v397_v58 }
  0xee   :  { %v274_v59 = vadd.f32 %v455_v43, %v273_v57  ;;  %429 = vst.msk [vmem:[%s845_s9 + $0x18] sm:$0xff] %vm48_vm0, %v403_v56 }
  0xef   :  { %305 = vst.msk [vmem:[%s844_s8 + $0x18] sm:$0xff] %vm48_vm0, %v279_v55  ;;  %428 = vst.msk [vmem:[%s845_s9 + $0x10] sm:$0xff] %vm48_vm0, %v398_v60  ;;  %v565_v62 = vpop.f32.mrb[8].mxu0 }
  0xf0   :  { %304 = vst.msk [vmem:[%s844_s8 + $0x10] sm:$0xff] %vm48_vm0, %v274_v59  ;;  %v545_v61 = vpop.f32.mrb[8].mxu1  ;;  %v413_v0 = vadd.f32 %v565_v62, %v464_v44  ;;  %v407_v2 = vpop.f32.mrb[9].mxu0 }
  0xf1   :  { %v289_v63 = vadd.f32 %v545_v61, %v455_v43  ;;  %v283_v1 = vpop.f32.mrb[9].mxu1  ;;  %v408_v4 = vadd.f32 %v464_v44, %v407_v2 }
  0xf2   :  { %v284_v3 = vadd.f32 %v455_v43, %v283_v1  ;;  %431 = vst.msk [vmem:[%s845_s9 + $0x28] sm:$0xff] %vm48_vm0, %v413_v0 }
  0xf3   :  { %307 = vst.msk [vmem:[%s844_s8 + $0x28] sm:$0xff] %vm48_vm0, %v289_v63  ;;  %430 = vst.msk [vmem:[%s845_s9 + $0x20] sm:$0xff] %vm48_vm0, %v408_v4  ;;  %v568_v6 = vpop.f32.mrb[10].mxu0 }
  0xf4   :  { %306 = vst.msk [vmem:[%s844_s8 + $0x20] sm:$0xff] %vm48_vm0, %v284_v3  ;;  %v548_v5 = vpop.f32.mrb[10].mxu1  ;;  %v423_v8 = vadd.f32 %v568_v6, %v464_v44  ;;  %v417_v10 = vpop.f32.mrb[11].mxu0 }
  0xf5   :  { %v299_v7 = vadd.f32 %v548_v5, %v455_v43  ;;  %v293_v9 = vpop.f32.mrb[11].mxu1  ;;  %v418_v12 = vadd.f32 %v464_v44, %v417_v10 }
  0xf6   :  { %v294_v11 = vadd.f32 %v455_v43, %v293_v9  ;;  %433 = vst.msk [vmem:[%s845_s9 + $0x38] sm:$0xff] %vm48_vm0, %v423_v8 }
  0xf7   :  { %309 = vst.msk [vmem:[%s844_s8 + $0x38] sm:$0xff] %vm48_vm0, %v299_v7  ;;  %432 = vst.msk [vmem:[%s845_s9 + $0x30] sm:$0xff] %vm48_vm0, %v418_v12 }
  0xf8   :  { %308 = vst.msk [vmem:[%s844_s8 + $0x30] sm:$0xff] %vm48_vm0, %v294_v11 }

</bundles_post_ra>
